<compile_context>
chip_gen: v7x
topology: tpu7x:2x2x1
jax: 0.10.0
libtpu: 0.0.40
codegen_flags: <defaults>
</compile_context>

<pallas_src>
import functools

import jax
import jax.numpy as jnp
from jax.experimental import pallas as pl
from jax.experimental.pallas import tpu as pltpu


def _attack_add_kernel(x_ref, a_ref, o_ref):
    # x_ref / o_ref: (TILE_ROWS, TILE_F) VMEM tiles.
    # a_ref: (1, TILE_F) attack slice, sublane-broadcast over the tile's rows.
    o_ref[...] = x_ref[...] + a_ref[...]


def _sublane_granularity(dtype) -> int:
    itemsize = jnp.dtype(dtype).itemsize
    return {4: 8, 2: 16, 1: 32}.get(itemsize, 8)


def _default_budgets():
    """Per-chip VMEM / tile budgets.

    Pipelined footprint ~= 4 * tile_bytes (double-buffered X tile + output
    tile, the (1, tile_f) attack buffer is negligible), so tile_bytes is set
    to ~1/5 of the scoped-VMEM limit:
      v5e/v6e (128 MiB VMEM)   -> limit ~96 MiB, tile ~19 MiB
      v7x     (64 MiB per TC)  -> limit ~48 MiB, tile ~9.6 MiB
      unknown                  -> limit  56 MiB, tile   8 MiB (safe everywhere)
    """
    try:
        vmem = int(pltpu.get_tpu_info().vmem_capacity_bytes)
        vmem_limit = min(96 << 20, max(32 << 20, vmem - (16 << 20)))
    except Exception:  # no device / query unsupported -> v7x-safe fallback
        vmem_limit = 56 << 20
    tile_bytes = max(4 << 20, vmem_limit // 5)
    return tile_bytes, vmem_limit


def _pick_tiles(N, F, dtype, tile_bytes):
    """Budget-safe, dtype-aware (tile_rows, tile_f)."""
    itemsize = jnp.dtype(dtype).itemsize
    sub = _sublane_granularity(dtype)

    # Lane (feature) tiling: only when one sublane-granule row slab would blow
    # the budget AND F can be tiled legally (multiple of 128).  Otherwise the
    # full-F block keeps stores as unmasked full-vreg vst (or is the only legal
    # choice when F is not a multiple of 128).
    tile_f = F
    if F % 128 == 0 and F * sub * itemsize > tile_bytes:
        budget_lanes = max(128, (tile_bytes // (sub * itemsize)) // 128 * 128)
        tile_f = min(F, budget_lanes)

    # Row tiling to the byte budget, rounded down to the sublane granularity.
    # `max(sub, ...)` is the legal minimum; it can only exceed the budget when
    # F is huge and not 128-divisible (no legal lane tiling exists).
    max_rows = max(1, tile_bytes // (tile_f * itemsize))
    tile_rows = max(sub, (max_rows // sub) * sub)

    # Megacore / pipelining: aim for >= 4 grid steps along the batch axis so
    # the "parallel" axis can shard across v7x's 2 TensorCores and step i+1
    # reads overlap step i writebacks.
    target = pl.cdiv(N, 4)
    target = max(sub, ((target + sub - 1) // sub) * sub)
    tile_rows = min(tile_rows, target, N)
    return tile_rows, tile_f


@functools.partial(
    jax.jit,
    static_argnames=("tile_bytes", "vmem_limit_bytes", "donate_x_buffer"))
def universal_attack_forward(X, attack, *, tile_bytes=None,
                             vmem_limit_bytes=None, donate_x_buffer=False):
    """Computes X + attack (attack broadcast over the batch dim).

    X:      [N, U, W, n]
    attack: [1, U, W, n]
    returns X_attacked: [N, U, W, n]

    donate_x_buffer=True aliases the output onto X's HBM buffer
    (input_output_aliases={0: 0}).  Only enable it when the caller also donates
    X at the jit boundary; otherwise XLA inserts a defensive copy and the extra
    traffic makes this memory-bound kernel slower.
    """
    N, U, W, n = X.shape
    assert attack.shape == (1, U, W, n), (attack.shape, X.shape)

    if tile_bytes is None or vmem_limit_bytes is None:
        dflt_tile, dflt_limit = _default_budgets()
        tile_bytes = dflt_tile if tile_bytes is None else tile_bytes
        vmem_limit_bytes = dflt_limit if vmem_limit_bytes is None else vmem_limit_bytes

    # Lane-dense flattening: the attack row is identical for every batch entry,
    # so collapsing (U, W, n) into one feature axis keeps the broadcast trivial
    # and makes the last block dim large (unmasked stores when F % 128 == 0).
    # Under jit these reshapes are layout-only bitcasts around the pallas_call.
    F = U * W * n
    x2 = X.reshape(N, F)
    a2 = attack.reshape(1, F).astype(X.dtype)   # explicit cast: no silent promote

    tile_rows, tile_f = _pick_tiles(N, F, X.dtype, tile_bytes)
    grid = (pl.cdiv(N, tile_rows), pl.cdiv(F, tile_f))

    x_spec = pl.BlockSpec((tile_rows, tile_f), lambda i, j: (i, j))
    # Attack's row-block index is constant over the batch axis: its tile is
    # DMA'd once per feature block (once total when tile_f == F) and stays
    # resident in VMEM across the whole batch sweep.
    a_spec = pl.BlockSpec((1, tile_f), lambda i, j: (0, j))
    o_spec = pl.BlockSpec((tile_rows, tile_f), lambda i, j: (i, j))

    out = pl.pallas_call(
        _attack_add_kernel,
        out_shape=jax.ShapeDtypeStruct((N, F), X.dtype),
        grid_spec=pltpu.PrefetchScalarGridSpec(
            num_scalar_prefetch=0,
            grid=grid,
            in_specs=[x_spec, a_spec],
            out_specs=o_spec,
        ),
        input_output_aliases={0: 0} if donate_x_buffer else {},
        compiler_params=pltpu.CompilerParams(
            dimension_semantics=("parallel", "parallel"),  # megacore-shardable
            vmem_limit_bytes=vmem_limit_bytes,
        ),
    )(x2, a2)

    return out.reshape(N, U, W, n)


class UniversalAttack:
    """JAX counterpart of the PyTorch Universal_Attack module."""

    def __init__(self, init_attack):
        # attack parameter, shape [1, U, W, n]
        self.attack = init_attack

    def __call__(self, X, M):
        X_attacked = universal_attack_forward(X, self.attack)
        # TODO(synk): torch.load(self.trained_model_path)(X_attacked, M) — the
        # downstream trained model is loaded from disk at forward time and has
        # no in-script definition; we return the attacked embeddings (and M).
        # For best performance this add should ultimately be fused as a
        # prologue of that model's first layer instead of a standalone pass.
        return X_attacked, M


if __name__ == "__main__":
    key = jax.random.PRNGKey(0)
    kx, ka, km = jax.random.split(key, 3)

    # Small shapes consistent with forward(): N x U x W x n, F = U*W*n = 1024.
    N, U, W, n = 16, 4, 8, 32
    X = jax.random.normal(kx, (N, U, W, n), dtype=jnp.float32)
    init_attack = 0.01 * jax.random.normal(ka, (1, U, W, n), dtype=jnp.float32)
    M = (jax.random.uniform(km, (N, U, W)) > 0.2).astype(jnp.float32)  # word mask

    ref = X + jnp.broadcast_to(init_attack, X.shape)

    # Default path (>= 2 grid steps even at this tiny N, so the parallel axis
    # can shard across both v7x TensorCores).
    model = UniversalAttack(init_attack)
    X_attacked, M_out = model(X, M)
    X_attacked = jax.block_until_ready(X_attacked)
    assert jnp.allclose(X_attacked, ref, atol=1e-6), "mismatch (default path)"

    # Forced small-tile / partial-final-block path: N=12 with an 8-row slab
    # budget -> blocks of 8 and a ragged 4-row tail (padded writeback).
    N2 = 12
    X2 = jax.random.normal(kx, (N2, U, W, n), dtype=jnp.float32)
    ref2 = X2 + jnp.broadcast_to(init_attack, X2.shape)
    out2 = universal_attack_forward(X2, init_attack,
                                    tile_bytes=8 * (U * W * n) * 4)
    out2 = jax.block_until_ready(out2)
    assert jnp.allclose(out2, ref2, atol=1e-6), "mismatch (partial block path)"

    # bf16 path: exercises the dtype-aware sublane granularity and the explicit
    # attack cast (no silent f32 promote / downcast mismatch).
    Xb = X.astype(jnp.bfloat16)
    refb = Xb + jnp.broadcast_to(init_attack.astype(jnp.bfloat16), Xb.shape)
    outb = jax.block_until_ready(universal_attack_forward(Xb, init_attack))
    assert jnp.allclose(outb.astype(jnp.float32), refb.astype(jnp.float32),
                        atol=1e-2), "mismatch (bf16 path)"

    print("KERNEL_OK")
</pallas_src>

<mosaic_0001>
module attributes {stable_mosaic.version = 11 : i64} {
  func.func @_attack_add_kernel(%arg0: i32, %arg1: i32, %arg2: memref<8x1024xf32, #tpu.memory_space<vmem>>, %arg3: memref<1x1024xf32, #tpu.memory_space<vmem>>, %arg4: memref<8x1024xf32, #tpu.memory_space<vmem>>) attributes {dimension_semantics = [#tpu.dimension_semantics<parallel>, #tpu.dimension_semantics<parallel>], iteration_bounds = array<i64: 2, 1>, scalar_prefetch = 0 : i64, scratch_operands = 0 : i64, tpu.core_type = #tpu.core_type<tc>, window_params = [{transform_indices = @transform_0, window_bounds = array<i64: 8, 1024>}, {transform_indices = @transform_1, window_bounds = array<i64: 1, 1024>}, {transform_indices = @transform_2, window_bounds = array<i64: 8, 1024>}]} {
    %c0 = arith.constant 0 : index
    %c0_0 = arith.constant 0 : index
    %0 = vector.load %arg2[%c0, %c0_0] : memref<8x1024xf32, #tpu.memory_space<vmem>>, vector<8x1024xf32>
    %c0_1 = arith.constant 0 : index
    %c0_2 = arith.constant 0 : index
    %1 = vector.load %arg3[%c0_1, %c0_2] : memref<1x1024xf32, #tpu.memory_space<vmem>>, vector<1x1024xf32>
    %2 = vector.broadcast %1 : vector<1x1024xf32> to vector<8x1024xf32>
    %3 = arith.addf %0, %2 : vector<8x1024xf32>
    %c0_3 = arith.constant 0 : index
    %c0_4 = arith.constant 0 : index
    %4 = vector.load %arg4[%c0_3, %c0_4] : memref<8x1024xf32, #tpu.memory_space<vmem>>, vector<8x1024xf32>
    tpu.vector_store %arg4[%c0_3, %c0_4], %3 {strides = array<i32>} : memref<8x1024xf32, #tpu.memory_space<vmem>>, vector<8x1024xf32>,
    return
  }
  func.func @transform_0(%arg0: i32, %arg1: i32) -> (i32, i32) {
    %c0_i32 = arith.constant 0 : i32
    return %arg0, %arg1 : i32, i32
  }
  func.func @transform_1(%arg0: i32, %arg1: i32) -> (i32, i32) {
    %c0_i32 = arith.constant 0 : i32
    %c0_i32_0 = arith.constant 0 : i32
    return %c0_i32, %arg1 : i32, i32
  }
  func.func @transform_2(%arg0: i32, %arg1: i32) -> (i32, i32) {
    %c0_i32 = arith.constant 0 : i32
    return %arg0, %arg1 : i32, i32
  }
}

</mosaic_0001>

<bundles_post_ra>
// kernel: universal_attack_forward.1
= control target key start
LH: loop header
LB: loop body
LE: loop exit
PB: predicated region body
PF: predicated region fallthrough
CT: control target
= control target key end

     0   :  { %s444_s9 = smov 0   ;;  %s446_s10 = smov 0   ;;  %s480_s0 = inlined_call_operand.vmem [shape: f32[16,1024], index: 0, kind: input, shape index: {}]   ;;  %s481_s1 = inlined_call_operand.vmem [shape: f32[1,1024], index: 1, kind: input, shape index: {}]   ;;  %s482_s2 = inlined_call_operand.vmem [shape: f32[16,1024], index: 2, kind: output, shape index: {}]  }
   0x1   :  { %s448_s11 = smov 0  }
   0x2 LB: > { %s24_s12 = sadd.s32 1, %s423_s10  ;;  %p372_p0 = scmp.ge.s32.totalorder %s427_s11, 1  ;;  %s427_s11 = sphi %s448_s11, %s12_s11   ;;  %s423_s10 = sphi %s446_s10, %s484_s10   ;;  %s419_s9 = sphi %s444_s9, %s483_s9  }
   0x3   : > { %p26_p1 = scmp.ge.s32.totalorder %s24_s12, 2  ;;  %p143_p2 = scmp.lt.s32.totalorder %s427_s11, 3 }
   0x5   : > { %s486_s12 = smov (%p26_p1, %s24_s12), 0  ;;  %p144_p3 = pnand %p372_p0, %p143_p2 }
   0x6   : > { %p178_p4 = scmp.lt.s32.totalorder (!%p144_p3), %s419_s9, 1  ;;  %v212_v0 = vlaneseq (!%p144_p3)  ;;  %v210_v2 = vld [vmem:[%s481_s1] sm:$0xff] (!%p144_p3) }
   0x7   : > { %147 = sbr.rel (%p144_p3) target bundleno = 24 (0x18), region = 28 }
   0x8   : > { %v213_v1 = vshrl.u32 (!%p144_p3), %v212_v0, 7 }
   0xa   : > { %v214_v3 = vsub.s32 (!%p144_p3), 0, %v213_v1  ;;  %v218_v4 = vsub.s32 (!%p144_p3), 1, %v213_v1  ;;  %v222_v5 = vsub.s32 (!%p144_p3), 2, %v213_v1  ;;  %v226_v6 = vsub.s32 (!%p144_p3), 3, %v213_v1 }
   0xb   : > { %v230_v7 = vsub.s32 (!%p144_p3), 4, %v213_v1  ;;  %v234_v8 = vsub.s32 (!%p144_p3), 5, %v213_v1  ;;  %v238_v9 = vsub.s32 (!%p144_p3), 6, %v213_v1  ;;  %v242_v10 = vsub.s32 (!%p144_p3), 7, %v213_v1 }
   0xc   : > { %v215_v12 = vrot.slane (!%p144_p3), %v210_v2, %v214_v3  ;;  %v219_v14 = vrot.slane (!%p144_p3), %v210_v2, %v218_v4  ;;  %v223_v16 = vrot.slane (!%p144_p3), %v210_v2, %v222_v5  ;;  %v227_v17 = vrot.slane (!%p144_p3), %v210_v2, %v226_v6 }
   0xd   : > { %v231_v20 = vrot.slane (!%p144_p3), %v210_v2, %v230_v7  ;;  %v235_v22 = vrot.slane (!%p144_p3), %v210_v2, %v234_v8  ;;  %v239_v23 = vrot.slane (!%p144_p3), %v210_v2, %v238_v9  ;;  %v243_v24 = vrot.slane (!%p144_p3), %v210_v2, %v242_v10 }
   0xe   : > { %s488_s9 = smov (!%p178_p4, %s419_s9), 1 }
   0xf   : > { %s379_s15 = sshll.u32 %s488_s9, 6 }
  0x10   : > { %s185_s18 = scalar_lea.vmem %s480_s0, %s379_s15  ;;  %s200_s21 = scalar_lea.vmem %s482_s2, %s379_s15 }
  0x11   : > { %v202_v11 = vld [vmem:[%s185_s18] sm:$0xff]  ;;  %v203_v13 = vld [vmem:[%s185_s18 + $0x8] sm:$0xff]  ;;  %v204_v15 = vld [vmem:[%s185_s18 + $0x10] sm:$0xff] }
  0x12   : > { %v205_v18 = vld [vmem:[%s185_s18 + $0x18] sm:$0xff]  ;;  %v206_v19 = vld [vmem:[%s185_s18 + $0x20] sm:$0xff]  ;;  %v207_v21 = vld [vmem:[%s185_s18 + $0x28] sm:$0xff]  ;;  %v252_v25 = vadd.f32 %v215_v12, %v202_v11  ;;  %v253_v26 = vadd.f32 %v219_v14, %v203_v13  ;;  %v254_v27 = vadd.f32 %v223_v16, %v204_v15 }
  0x13   : > { %v255_v28 = vadd.f32 %v227_v17, %v205_v18  ;;  %v208_v29 = vld [vmem:[%s185_s18 + $0x30] sm:$0xff]  ;;  %v209_v30 = vld [vmem:[%s185_s18 + $0x38] sm:$0xff]  ;;  %v256_v31 = vadd.f32 %v231_v20, %v206_v19  ;;  %v257_v32 = vadd.f32 %v235_v22, %v207_v21 }
  0x14   : > { %v258_v33 = vadd.f32 %v239_v23, %v208_v29  ;;  %v259_v34 = vadd.f32 %v243_v24, %v209_v30  ;;  %260 = vst [vmem:[%s200_s21] sm:$0xff] %v252_v25  ;;  %261 = vst [vmem:[%s200_s21 + $0x8] sm:$0xff] %v253_v26 }
  0x15   : > { %262 = vst [vmem:[%s200_s21 + $0x10] sm:$0xff] %v254_v27  ;;  %263 = vst [vmem:[%s200_s21 + $0x18] sm:$0xff] %v255_v28 }
  0x16   : > { %264 = vst [vmem:[%s200_s21 + $0x20] sm:$0xff] %v256_v31  ;;  %265 = vst [vmem:[%s200_s21 + $0x28] sm:$0xff] %v257_v32 }
  0x17   : > { %266 = vst [vmem:[%s200_s21 + $0x30] sm:$0xff] %v258_v33  ;;  %267 = vst [vmem:[%s200_s21 + $0x38] sm:$0xff] %v259_v34 }
  0x18 PF: > { %s12_s11 = sadd.s32 1, %s427_s11   ;;  %s483_s9 = smov %s423_s10 }
  0x19   : > { %p9_p5 = scmp.ge.s32.totalorder %s12_s11, 4   ;;  %s484_s10 = smov %s486_s12 }
  0x1b   :  { %11 = sbr.rel (!%p9_p5) target bundleno = 2 (0x2), region = 61 }

</bundles_post_ra>
